<compile_context>
chip_gen: v6e
topology: v6e:2x2x1
jax: 0.10.0
libtpu: 0.0.40
codegen_flags: <defaults>
</compile_context>

<pallas_src>
import jax
import jax.numpy as jnp
from jax.experimental import pallas as pl
from jax.experimental.pallas import tpu as pltpu

_MIN_KERNEL_ELEMS = 65536            # below this, plain XLA wins on latency
_BLOCK_BYTES = 4 * 1024 * 1024       # ~4 MiB block -> ~16 MiB double-buffered
_VMEM_LIMIT_BYTES = 32 * 1024 * 1024 # explicit: > v5e's 16 MiB scoped default


def lr_kernel(w_ref, b_ref, x_ref, o_ref):
    # w_ref, b_ref: (1, 1) f32 scalars in SMEM.
    # x_ref, o_ref: (tile_r, c) blocks in VMEM, in the caller's native dtype.
    w = w_ref[0, 0]
    b = b_ref[0, 0]
    o_ref[...] = (x_ref[...].astype(jnp.float32) * w + b).astype(o_ref.dtype)


def _xla_forward(x, w32, b32, out_dtype):
    # Single fused elementwise pass; optimal for tiny or misaligned inputs.
    return (x.astype(jnp.float32) * w32 + b32).astype(out_dtype)


def lr_forward(x, weight, bias, *, min_kernel_elems=_MIN_KERNEL_ELEMS):
    """y = x @ W.T + b for W of shape (1, 1), b of shape (1,). Output shape == x.shape."""
    orig_shape = x.shape
    orig_dtype = x.dtype
    assert orig_shape[-1] == 1, "LR expects in_features == 1"

    n = x.size
    itemsize = jnp.dtype(orig_dtype).itemsize
    sub = max(8, 32 // itemsize)  # sublane packing: f32 -> 8, bf16/f16 -> 16, int8 -> 32

    w32 = weight.reshape(()).astype(jnp.float32)
    b32 = bias.reshape(()).astype(jnp.float32)

    # Small-n / misaligned bypass: pallas_call launch cost + layout plumbing
    # would dominate, and a fused XLA FMA is already HBM-roofline-bound.
    if n < min_kernel_elems or n % (sub * 128) != 0:
        return _xla_forward(x, w32, b32, orig_dtype)

    # Lane-dense slab: pick the widest lane dim C (multiple of 128) such that
    # rows = n // C stays a multiple of the sublane packing.  The reshape of a
    # contiguous row-major array is free (no extra HBM traffic).
    c = 128
    for cand in (1024, 512, 256):
        if n % (cand * sub) == 0:
            c = cand
            break
    rows = n // c

    # tile_r: byte-capped block (<= ~4 MiB), sublane-aligned, and small enough
    # that the row grid has >= 2 steps when possible (v7x: both TCs stream).
    tile_r = (_BLOCK_BYTES // (c * itemsize) // sub) * sub
    if rows >= 2 * sub:
        tile_r = min(tile_r, (rows // 2 // sub) * sub)
    tile_r = max(sub, min(tile_r, rows))

    x2d = x.reshape(rows, c)          # free: contiguous reshape, no pad, no copy
    w_smem = w32.reshape(1, 1)
    b_smem = b32.reshape(1, 1)

    grid = (pl.cdiv(rows, tile_r),)

    out2d = pl.pallas_call(
        lr_kernel,
        out_shape=jax.ShapeDtypeStruct((rows, c), orig_dtype),
        grid=grid,
        in_specs=[
            pl.BlockSpec(memory_space=pltpu.SMEM),
            pl.BlockSpec(memory_space=pltpu.SMEM),
            pl.BlockSpec((tile_r, c), lambda i: (i, 0)),
        ],
        out_specs=pl.BlockSpec((tile_r, c), lambda i: (i, 0)),
        compiler_params=pltpu.CompilerParams(
            dimension_semantics=("parallel",),
            vmem_limit_bytes=_VMEM_LIMIT_BYTES,
        ),
        cost_estimate=pl.CostEstimate(
            flops=2 * n,
            transcendentals=0,
            bytes_accessed=2 * n * itemsize,
        ),
    )(w_smem, b_smem, x2d)

    return out2d.reshape(orig_shape)  # free reshape: no tail slice needed


if __name__ == "__main__":
    key = jax.random.PRNGKey(0)
    kx, kw, kb, kx2, kx3, kx4 = jax.random.split(key, 6)

    # Deterministic parameters matching nn.Linear(1, 1) shapes.
    weight = jax.random.uniform(kw, (1, 1), jnp.float32, minval=-1.0, maxval=1.0)
    bias = jax.random.uniform(kb, (1,), jnp.float32, minval=-1.0, maxval=1.0)

    # 1) Tiny batch (8, 1): exercises the small-n XLA bypass (latency path).
    x_small = jax.random.normal(kx, (8, 1), jnp.float32)
    y_small = jax.block_until_ready(lr_forward(x_small, weight, bias))
    assert y_small.shape == (8, 1)
    assert jnp.allclose(y_small, x_small @ weight.T + bias, atol=1e-6)

    # 2) (4096, 1) f32, forced through the Pallas kernel (single-block grid).
    x_mid = jax.random.normal(kx2, (4096, 1), jnp.float32)
    y_mid = jax.block_until_ready(lr_forward(x_mid, weight, bias, min_kernel_elems=0))
    assert y_mid.shape == (4096, 1)
    assert jnp.allclose(y_mid, x_mid @ weight.T + bias, atol=1e-6)

    # 3) (131072, 1) f32: default kernel path, multi-step "parallel" grid.
    x_big = jax.random.normal(kx3, (131072, 1), jnp.float32)
    y_big = jax.block_until_ready(lr_forward(x_big, weight, bias))
    assert y_big.shape == (131072, 1)
    assert jnp.allclose(y_big, x_big @ weight.T + bias, atol=1e-6)

    # 4) (16384, 1) bf16: native-dtype streaming, f32 math inside the kernel.
    x_bf16 = jax.random.normal(kx4, (16384, 1), jnp.bfloat16)
    y_bf16 = jax.block_until_ready(lr_forward(x_bf16, weight, bias, min_kernel_elems=0))
    assert y_bf16.dtype == jnp.bfloat16 and y_bf16.shape == (16384, 1)
    y_ref = (x_bf16.astype(jnp.float32) * weight[0, 0] + bias[0]).astype(jnp.bfloat16)
    assert jnp.allclose(y_bf16.astype(jnp.float32), y_ref.astype(jnp.float32), atol=1e-2)

    print("KERNEL_OK")
</pallas_src>

<mosaic_0001>
module attributes {stable_mosaic.version = 11 : i64} {
  func.func @lr_kernel(%arg0: i32, %arg1: memref<1x1xf32, #tpu.memory_space<smem>>, %arg2: memref<1x1xf32, #tpu.memory_space<smem>>, %arg3: memref<8x512xf32, #tpu.memory_space<vmem>>, %arg4: memref<8x512xf32, #tpu.memory_space<vmem>>) attributes {dimension_semantics = [#tpu.dimension_semantics<parallel>], iteration_bounds = array<i64: 1>, scalar_prefetch = 0 : i64, scratch_operands = 0 : i64, tpu.core_type = #tpu.core_type<tc>, window_params = [{transform_indices = @transform_0, window_bounds = array<i64: 1, 1>}, {transform_indices = @transform_1, window_bounds = array<i64: 1, 1>}, {transform_indices = @transform_2, window_bounds = array<i64: 8, 512>}, {transform_indices = @transform_3, window_bounds = array<i64: 8, 512>}]} {
    %c0 = arith.constant 0 : index
    %c0_0 = arith.constant 0 : index
    %0 = memref.load %arg1[%c0, %c0_0] : memref<1x1xf32, #tpu.memory_space<smem>>
    %c0_1 = arith.constant 0 : index
    %c0_2 = arith.constant 0 : index
    %1 = memref.load %arg2[%c0_1, %c0_2] : memref<1x1xf32, #tpu.memory_space<smem>>
    %c0_3 = arith.constant 0 : index
    %c0_4 = arith.constant 0 : index
    %2 = vector.load %arg3[%c0_3, %c0_4] : memref<8x512xf32, #tpu.memory_space<vmem>>, vector<8x512xf32>
    %3 = vector.broadcast %0 : f32 to vector<8x512xf32>
    %4 = arith.mulf %2, %3 : vector<8x512xf32>
    %5 = vector.broadcast %1 : f32 to vector<8x512xf32>
    %6 = arith.addf %4, %5 : vector<8x512xf32>
    %c0_5 = arith.constant 0 : index
    %c0_6 = arith.constant 0 : index
    %7 = vector.load %arg4[%c0_5, %c0_6] : memref<8x512xf32, #tpu.memory_space<vmem>>, vector<8x512xf32>
    tpu.vector_store %arg4[%c0_5, %c0_6], %6 {strides = array<i32>} : memref<8x512xf32, #tpu.memory_space<vmem>>, vector<8x512xf32>,
    return
  }
  func.func @transform_0(%arg0: i32) -> (i32, i32) {
    %c0_i32 = arith.constant 0 : i32
    %c0_i32_0 = arith.constant 0 : i32
    %c0_i32_1 = arith.constant 0 : i32
    return %c0_i32, %c0_i32_0 : i32, i32
  }
  func.func @transform_1(%arg0: i32) -> (i32, i32) {
    %c0_i32 = arith.constant 0 : i32
    %c0_i32_0 = arith.constant 0 : i32
    %c0_i32_1 = arith.constant 0 : i32
    return %c0_i32, %c0_i32_0 : i32, i32
  }
  func.func @transform_2(%arg0: i32) -> (i32, i32) {
    %c0_i32 = arith.constant 0 : i32
    %c0_i32_0 = arith.constant 0 : i32
    return %arg0, %c0_i32 : i32, i32
  }
  func.func @transform_3(%arg0: i32) -> (i32, i32) {
    %c0_i32 = arith.constant 0 : i32
    %c0_i32_0 = arith.constant 0 : i32
    return %arg0, %c0_i32 : i32, i32
  }
}

</mosaic_0001>

<bundles_post_ra>
// kernel: tpu_custom_call.1
= control target key start
LH: loop header
LB: loop body
LE: loop exit
PB: predicated region body
PF: predicated region fallthrough
CT: control target
= control target key end

     0   :  { %10 = vsyncpa [#allocation5], 0  ;;  %s144_s0 = inlined_call_operand.<no memory space> [shape: f32[1,1], index: 0, kind: input, shape index: {}]   ;;  %s145_s1 = inlined_call_operand.<no memory space> [shape: f32[1,1], index: 1, kind: input, shape index: {}]   ;;  %s146_s2 = inlined_call_operand.hbm [shape: f32[8,512], index: 2, kind: input, shape index: {}]   ;;  %s147_s3 = inlined_call_operand.hbm [shape: f32[8,512], index: 3, kind: output, shape index: {}]  }
   0x1   :  { %11 = vsyncpa [#allocation6], 0  ;;  %s110_s12 = smov [#allocation4]  }
   0x2   :  { %s22_s13 = sshll.u32 %s110_s12, 4  ;;  %s23_s13 = int_to_ptr.vmem [resolvable:$true] %s22_s13 }
   0x3   :  { %s74_s14 = scalar_lea.vmem %s23_s13, 512  ;;  %p79_p1 = scmp.lt.s32.totalorder %s23_s13, %s23_s13 }
   0x4   :  { %p75_p0 = scmp.ne.s32.totalorder %s23_s13, %s74_s14  ;;  %p80_p2 = scmp.lt.s32.totalorder %s74_s14, %s74_s14 }
   0x6   :  { %p81_p3 = por %p80_p2, %p79_p1 }
   0x8   :  { %p82_p4 = pnand %p81_p3, %p75_p0 }
   0xa   :  { %85 = shalt.err (!%p82_p4)
}
   0xb   :  { %25 = dma.hbm_to_vmem [thread:$0]  %s146_s2, 512, %s23_s13, [#allocation5]  }
   0xc   :  { %106 = dma.done.wait [#allocation5], 512  }
   0xd   :  { %107 = vsyncadd [#allocation5], 4294966784  ;;  %v35_v0 = vstv %s144_s0  ;;  %v31_v1 = vld [vmem:[#allocation4] sm:$0xff]  ;;  %v40_v2 = vstv %s145_s1  ;;  %v32_v3 = vld [vmem:[#allocation4 + $0x8] sm:$0xff]  ;;  %s111_s21 = smov [#allocation7]  }
   0xe   :  { %v33_v4 = vld [vmem:[#allocation4 + $0x10] sm:$0xff]  ;;  %v36_v5 = vmul.f32 %v35_v0, %v31_v1  ;;  %v37_v6 = vmul.f32 %v35_v0, %v32_v3  ;;  %v34_v8 = vld [vmem:[#allocation4 + $0x18] sm:$0xff]  ;;  %s55_s22 = sshll.u32 %s111_s21, 4  ;;  %s56_s22 = int_to_ptr.vmem [resolvable:$true] %s55_s22 }
   0xf   :  { %v38_v7 = vmul.f32 %v35_v0, %v33_v4  ;;  %v39_v9 = vmul.f32 %v35_v0, %v34_v8  ;;  %s86_s0 = scalar_lea.vmem %s56_s22, 512  ;;  %p91_p6 = scmp.lt.s32.totalorder %s56_s22, %s56_s22 }
  0x10   :  { %v41_v10 = vadd.f32 %v40_v2, %v36_v5  ;;  %v42_v11 = vadd.f32 %v40_v2, %v37_v6  ;;  %p87_p5 = scmp.ne.s32.totalorder %s56_s22, %s86_s0  ;;  %p92_p7 = scmp.lt.s32.totalorder %s86_s0, %s86_s0 }
  0x11   :  { %v43_v12 = vadd.f32 %v40_v2, %v38_v7  ;;  %v44_v13 = vadd.f32 %v40_v2, %v39_v9 }
  0x12   :  { %45 = vst [vmem:[#allocation7] sm:$0xff] %v41_v10  ;;  %46 = vst [vmem:[#allocation7 + $0x8] sm:$0xff] %v42_v11  ;;  %p93_p8 = por %p92_p7, %p91_p6 }
  0x13   :  { %47 = vst [vmem:[#allocation7 + $0x10] sm:$0xff] %v43_v12  ;;  %48 = vst [vmem:[#allocation7 + $0x18] sm:$0xff] %v44_v13 }
  0x14   :  { %p94_p9 = pnand %p93_p8, %p87_p5 }
  0x16   :  { %97 = shalt.err (!%p94_p9)
}
  0x17   :  { %58 = dma.vmem_to_hbm [thread:$0]  %s56_s22, 512, %s147_s3, [#allocation6]  }
  0x18   :  { %108 = dma.done.wait [#allocation6], 512  }
  0x19   :  { %109 = vsyncadd [#allocation6], 4294966784 }
  0x1a   :  { %62 = vsyncpa [#allocation5], 1 }
  0x1b   :  { %63 = vsyncpa [#allocation6], 1 }

</bundles_post_ra>
